<compile_context>
chip_gen: v7x
topology: tpu7x:2x2x1
jax: 0.10.0
libtpu: 0.0.40
codegen_flags: <defaults>
</compile_context>

<pallas_src>
import functools

import numpy as np
import jax
import jax.numpy as jnp
from jax.experimental import pallas as pl
from jax.experimental.pallas import tpu as pltpu

LOG_STD_MAX = 2.0
LOG_STD_MIN = -10.0

# ---------------- model hyper-parameters (small synthetic config) -----------
BATCH = 2
OBS_C, OBS_H, OBS_W = 4, 16, 16          # obs_shape = (4, 16, 16)
STATE_DIM = 6                            # state_shape = (6,)
ACTION_DIM = 4
CONV_PARAMS = [[OBS_C, 8, 3, 2], [8, 8, 3, 2]]   # (in, out, kernel, stride)
MLP_HIDDEN = 32                          # mlp_params = [[latent, 32], [32, 2*A]]


def conv_out_size(n, k, s):
    return (n - k) // s + 1


_C0, _C1 = CONV_PARAMS[0], CONV_PARAMS[1]
H1 = conv_out_size(OBS_H, _C0[2], _C0[3])          # 7
W1 = conv_out_size(OBS_W, _C0[2], _C0[3])          # 7
FEAT_H = conv_out_size(H1, _C1[2], _C1[3])         # 3
FEAT_W = conv_out_size(W1, _C1[2], _C1[3])         # 3
N_POS = FEAT_H * FEAT_W                            # 9 final spatial positions
N_TAP = _C1[2] * _C1[2]                            # 9 conv-2 taps
PATCH_K = _C0[2] * _C0[2] * _C0[0]                 # 36 = conv-1 patch length
C_MID = _C0[1]                                     # conv-1 out channels (8)
C_OUT = _C1[1]                                     # conv-2 out channels (8)
LATENT_DIM = 2 * C_OUT + STATE_DIM                 # 22
DATA_W = N_TAP * PATCH_K                           # 324 (data-slab width)


def _round8(v):
    return ((v + 7) // 8) * 8


# -------- weight-slab row offsets (all 8-aligned, static in-kernel slices) --
R_WBD = 0                                          # block-diag conv1  (324, 72)
R_B0 = _round8(N_TAP * PATCH_K)                    # 328: tiled conv1 bias (1, 72)
R_WC1 = R_B0 + 8                                   # 336: stacked conv2 w (72, 8)
R_B1C = R_WC1 + _round8(N_TAP * C_MID)             # 408: conv2 bias       (1, 8)
R_WL1 = R_B1C + 8                                  # 416: trunk w1        (22, 32)
R_BL1 = R_WL1 + _round8(LATENT_DIM)                # 440: trunk b1         (1, 32)
R_WL2 = R_BL1 + 8                                  # 448: trunk w2        (32, 8)
R_BL2 = R_WL2 + _round8(MLP_HIDDEN)                # 480: trunk b2         (1, 8)
W_ROWS = R_BL2 + 8                                 # 488
W_COLS = 128                                       # lane-dense slab width


def _data_offsets(n):
    """Row offsets inside the (rows, DATA_W) data slab (8-aligned sections)."""
    r_state = _round8(n * N_POS)
    r_noise = r_state + _round8(n)
    r_seg = r_noise + _round8(n)
    rows = r_seg + _round8(3 * n)
    return r_state, r_noise, r_seg, rows


def _build_patch_indices():
    """Static indices so obs[:, ch, row, col] -> (N, N_POS, N_TAP*PATCH_K):
    column q = t*PATCH_K + m is conv-1 im2col element m feeding the conv-1
    output pixel that conv-2 tap t reads for final output position r (the row).
    This ordering matches the block-diagonal conv-1 weight slab."""
    k0, s0 = _C0[2], _C0[3]
    k1, s1 = _C1[2], _C1[3]
    cin0 = _C0[0]
    m = np.arange(PATCH_K)
    ki1 = m // (k0 * cin0)
    kj1 = (m // cin0) % k0
    ci = m % cin0
    t = np.arange(N_TAP)
    ki2, kj2 = t // k1, t % k1
    r = np.arange(N_POS)
    oi, oj = r // FEAT_W, r % FEAT_W
    row = (s0 * s1) * oi[:, None, None] + s0 * ki2[None, :, None] + ki1[None, None, :]
    col = (s0 * s1) * oj[:, None, None] + s0 * kj2[None, :, None] + kj1[None, None, :]
    ch = np.broadcast_to(ci[None, None, :], row.shape)
    flat = lambda a: np.ascontiguousarray(a).reshape(N_POS, N_TAP * PATCH_K)
    return flat(ch), flat(row), flat(col)


_CH_IDX, _ROW_IDX, _COL_IDX = _build_patch_indices()


def _build_seg(n):
    """(3N, N*POS) segment matrix [ones | pos_x | pos_y]: one matmul against
    exp(feat) yields per-batch softmax denominators and keypoint numerators.
    Position buffers mirror the torch SpatialSoftmax meshgrid ('xy' quirk);
    like the previous version this relies on FEAT_H == FEAT_W."""
    pos_x, pos_y = np.meshgrid(np.linspace(-1.0, 1.0, FEAT_H),
                               np.linspace(-1.0, 1.0, FEAT_W))
    pos_x = pos_x.reshape(N_POS)
    pos_y = pos_y.reshape(N_POS)
    seg = np.zeros((3 * n, n * N_POS), np.float32)
    for b in range(n):
        cols = slice(b * N_POS, (b + 1) * N_POS)
        seg[b, cols] = 1.0
        seg[n + b, cols] = pos_x
        seg[2 * n + b, cols] = pos_y
    return seg


# ---------------------------------------------------------------------------
# Fused kernel: conv stack + spatial softmax + trunk + sample + squash
# ---------------------------------------------------------------------------
def _actor_fused_kernel(data_ref, w_ref, out_ref, *, n, r_state, r_noise, r_seg):
    a = ACTION_DIM
    np_rows = n * N_POS

    # ---- unpack the two slabs with static, 8-aligned slices ---------------
    patches = data_ref[0:np_rows, :]                          # (N*POS, TAP*K)
    state = data_ref[r_state:r_state + n, 0:STATE_DIM]        # (N, S)
    noise = data_ref[r_noise:r_noise + n, 0:a]                # (N, A)
    seg = data_ref[r_seg:r_seg + 3 * n, 0:np_rows]            # (3N, N*POS)

    w_bd = w_ref[R_WBD:R_WBD + N_TAP * PATCH_K, 0:N_TAP * C_MID]   # (324, 72)
    b0t = w_ref[R_B0:R_B0 + 1, 0:N_TAP * C_MID]                    # (1, 72)
    w_c1 = w_ref[R_WC1:R_WC1 + N_TAP * C_MID, 0:C_OUT]             # (72, 8)
    b1c = w_ref[R_B1C:R_B1C + 1, 0:C_OUT]                          # (1, 8)
    w_l1 = w_ref[R_WL1:R_WL1 + LATENT_DIM, 0:MLP_HIDDEN]           # (22, 32)
    b_l1 = w_ref[R_BL1:R_BL1 + 1, 0:MLP_HIDDEN]                    # (1, 32)
    w_l2 = w_ref[R_WL2:R_WL2 + MLP_HIDDEN, 0:2 * a]                # (32, 8)
    b_l2 = w_ref[R_BL2:R_BL2 + 1, 0:2 * a]                         # (1, 8)

    # ---- conv1 (+ReLU) and conv2: two batched MXU matmuls ------------------
    # TODO(synk): cast these matmul operands to bf16 (keep f32 accum/epilogue)
    # on v6e/v7x once batch grows; negligible at N=2.
    h = jnp.dot(patches, w_bd, preferred_element_type=jnp.float32) + b0t
    h = jnp.maximum(h, 0.0)                                   # ReLU after conv1 only
    feat = jnp.dot(h, w_c1, preferred_element_type=jnp.float32) + b1c  # (N*POS, C2)

    # ---- SpatialSoftmax over the spatial axis (temperature = 1) ------------
    # Softmax is shift-invariant, so subtracting the per-channel max over ALL
    # rows (>= any per-segment max) keeps exp() bounded; the per-batch sums /
    # keypoint expectations are one matmul against the [1 | px | py] segments.
    fmax = jnp.max(feat, axis=0, keepdims=True)
    e = jnp.exp(feat - fmax)                                  # (N*POS, C2)
    red = jnp.dot(seg, e, preferred_element_type=jnp.float32)  # (3N, C2)
    inv = 1.0 / red[0:n, :]                 # exact reciprocal (parity with torch)
    ex = red[n:2 * n, :] * inv              # (N, C2) expected-x keypoints
    ey = red[2 * n:3 * n, :] * inv          # (N, C2) expected-y keypoints

    # ---- trunk layer 1: Linear(latent, hidden) + ReLU -----------------------
    # w_l1 rows are pre-ordered [all-x | all-y | state]; three batched dots
    # avoid an in-kernel lane concat of [ex | ey | state] (2 extra tiny pushes).
    h1 = (jnp.dot(ex, w_l1[0:C_OUT, :], preferred_element_type=jnp.float32)
          + jnp.dot(ey, w_l1[C_OUT:2 * C_OUT, :], preferred_element_type=jnp.float32)
          + jnp.dot(state, w_l1[2 * C_OUT:, :], preferred_element_type=jnp.float32)
          + b_l1)
    h1 = jnp.maximum(h1, 0.0)

    # ---- trunk layer 2 -> [mu | log_std] (single (hidden, 2A) matmul) -------
    out2 = jnp.dot(h1, w_l2, preferred_element_type=jnp.float32) + b_l2
    mu = out2[:, 0:a]
    ls = jnp.tanh(out2[:, a:2 * a])
    log_std = LOG_STD_MIN + 0.5 * (LOG_STD_MAX - LOG_STD_MIN) * (ls + 1.0)
    std = jnp.exp(log_std)
    pi = mu + noise * std

    # gaussian_logprob
    log_pi = jnp.sum(-0.5 * noise * noise - log_std, axis=-1, keepdims=True)
    log_pi = log_pi - jnp.float32(0.5 * np.log(2.0 * np.pi) * a)

    # squash
    mu_t = jnp.tanh(mu)
    pi_t = jnp.tanh(pi)
    log_pi = log_pi - jnp.sum(
        jnp.log(jnp.maximum(1.0 - pi_t * pi_t, 0.0) + 1e-6),
        axis=-1, keepdims=True)

    # ---- single lane-packed output: [mu | pi | log_std | log_pi x A] -------
    out_ref[:, 0:a] = mu_t
    out_ref[:, a:2 * a] = pi_t
    out_ref[:, 2 * a:3 * a] = log_std
    out_ref[:, 3 * a:4 * a] = jnp.broadcast_to(log_pi, (n, a))


# ---------------------------------------------------------------------------
# Parameter construction (deterministic, mirrors the shapes from __init__)
# ---------------------------------------------------------------------------
def build_params(key):
    keys = jax.random.split(key, 4)
    cin0, c_mid, k0, _ = CONV_PARAMS[0]
    cin1, c_out, k1, _ = CONV_PARAMS[1]

    # conv weights: weight_init zeroes everything except the centre tap, which
    # gets an orthogonal-ish (here: scaled gaussian) init.  obs/255 is folded
    # into conv-1's weights (its bias is zero).
    w0 = jnp.zeros((k0, k0, cin0, c_mid), jnp.float32)
    w0 = w0.at[k0 // 2, k0 // 2].set(
        jax.random.normal(keys[0], (cin0, c_mid), jnp.float32) * 0.3)
    w0 = w0.reshape(k0 * k0 * cin0, c_mid) / 255.0
    b0 = jnp.zeros((c_mid,), jnp.float32)

    w1c = jnp.zeros((k1, k1, cin1, c_out), jnp.float32)
    w1c = w1c.at[k1 // 2, k1 // 2].set(
        jax.random.normal(keys[1], (cin1, c_out), jnp.float32) * 0.3)
    w1c = w1c.reshape(N_TAP, cin1, c_out)
    b1c = jnp.zeros((c_out,), jnp.float32)

    # trunk: Linear(latent, hidden) -> ReLU -> Linear(hidden, 2*action_dim).
    # keypoints are interleaved [x0, y0, x1, y1, ...]; reorder w1's rows to
    # [all-x | all-y | state] so the kernel only needs aligned slices.
    wl1 = jax.random.normal(keys[2], (LATENT_DIM, MLP_HIDDEN), jnp.float32) * 0.2
    wl1 = jnp.concatenate([wl1[0:2 * c_out:2], wl1[1:2 * c_out:2],
                           wl1[2 * c_out:]], axis=0)
    bl1 = jnp.zeros((MLP_HIDDEN,), jnp.float32)
    wl2 = jax.random.normal(keys[3], (MLP_HIDDEN, 2 * ACTION_DIM), jnp.float32) * 0.2
    bl2 = jnp.zeros((2 * ACTION_DIM,), jnp.float32)

    # ---- pack everything into one lane-dense (W_ROWS, 128) weight slab -----
    w_bd = jnp.kron(jnp.eye(N_TAP, dtype=jnp.float32), w0)     # block-diag (324, 72)
    b0t = jnp.tile(b0, (N_TAP,))                               # (72,)
    w_c1 = w1c.reshape(N_TAP * cin1, c_out)                    # row-stacked (72, 8)

    slab = jnp.zeros((W_ROWS, W_COLS), jnp.float32)
    slab = slab.at[R_WBD:R_WBD + w_bd.shape[0], 0:w_bd.shape[1]].set(w_bd)
    slab = slab.at[R_B0, 0:b0t.shape[0]].set(b0t)
    slab = slab.at[R_WC1:R_WC1 + w_c1.shape[0], 0:c_out].set(w_c1)
    slab = slab.at[R_B1C, 0:c_out].set(b1c)
    slab = slab.at[R_WL1:R_WL1 + LATENT_DIM, 0:MLP_HIDDEN].set(wl1)
    slab = slab.at[R_BL1, 0:MLP_HIDDEN].set(bl1)
    slab = slab.at[R_WL2:R_WL2 + MLP_HIDDEN, 0:2 * ACTION_DIM].set(wl2)
    slab = slab.at[R_BL2, 0:2 * ACTION_DIM].set(bl2)
    return {"w_slab": slab}


# ---------------------------------------------------------------------------
# Full ActorModel.forward (compute_pi=True, compute_log_pi=True)
# ---------------------------------------------------------------------------
@jax.jit
def actor_forward(params, obs_nchw, state, noise_key):
    x = obs_nchw.astype(jnp.float32)
    n = x.shape[0]
    a = ACTION_DIM

    # Single XLA gather: conv-1 im2col patches arranged per final output
    # position / conv-2 tap -> (N*POS, TAP*K).  The only host-side compute.
    # TODO(synk): if this gather shows up in profiles, switch to the 49-unique
    # conv-1-position layout to avoid the ~1.65x patch replication.
    patches = x[:, _CH_IDX, _ROW_IDX, _COL_IDX].reshape(n * N_POS, DATA_W)

    # Reparameterization noise (torch.randn_like equivalent); caller supplies
    # a fresh key per forward call.  Packed into the data slab -> no extra DMA.
    noise = jax.random.normal(noise_key, (n, a), jnp.float32)

    r_state, r_noise, r_seg, rows = _data_offsets(n)
    data = jnp.zeros((rows, DATA_W), jnp.float32)
    data = data.at[0:n * N_POS, :].set(patches)
    data = data.at[r_state:r_state + n, 0:STATE_DIM].set(state.astype(jnp.float32))
    data = data.at[r_noise:r_noise + n, 0:a].set(noise)
    data = data.at[r_seg:r_seg + 3 * n, 0:n * N_POS].set(jnp.asarray(_build_seg(n)))

    vmem = pl.BlockSpec(memory_space=pltpu.MemorySpace.VMEM)
    kernel = functools.partial(_actor_fused_kernel, n=n,
                               r_state=r_state, r_noise=r_noise, r_seg=r_seg)
    # TODO(synk): on v7x with batch >= ~8, add a batch grid axis with
    # dimension_semantics=("parallel",) so both TensorCores split it; at N=2
    # (and on single-TC v5e/v6e) a grid only adds per-step pipeline overhead.
    packed = pl.pallas_call(
        kernel,
        out_shape=jax.ShapeDtypeStruct((n, 4 * a), jnp.float32),
        in_specs=[vmem, vmem],
        out_specs=vmem,
    )(data, params["w_slab"])

    mu = packed[:, 0:a]
    pi = packed[:, a:2 * a]
    log_std = packed[:, 2 * a:3 * a]
    log_pi = packed[:, 3 * a:3 * a + 1]
    return mu, pi, log_pi, log_std


if __name__ == "__main__":
    key = jax.random.PRNGKey(0)
    k_param, k_obs, k_state, k_noise = jax.random.split(key, 4)

    params = build_params(k_param)
    obs = jax.random.uniform(k_obs, (BATCH, OBS_C, OBS_H, OBS_W),
                             jnp.float32, 0.0, 255.0)
    state = jax.random.normal(k_state, (BATCH, STATE_DIM), jnp.float32)

    mu, pi, log_pi, log_std = actor_forward(params, obs, state, k_noise)
    jax.block_until_ready((mu, pi, log_pi, log_std))

    assert mu.shape == (BATCH, ACTION_DIM)
    assert pi.shape == (BATCH, ACTION_DIM)
    assert log_pi.shape == (BATCH, 1)
    assert log_std.shape == (BATCH, ACTION_DIM)
    assert bool(jnp.all(jnp.isfinite(mu)))
    assert bool(jnp.all(jnp.isfinite(pi)))
    assert bool(jnp.all(jnp.isfinite(log_pi)))
    assert bool(jnp.all(jnp.isfinite(log_std)))
    assert bool(jnp.all(jnp.abs(mu) <= 1.0) & jnp.all(jnp.abs(pi) <= 1.0))
    assert bool(jnp.all(log_std >= LOG_STD_MIN) & jnp.all(log_std <= LOG_STD_MAX))
    print("KERNEL_OK")
</pallas_src>

<mosaic_0001>
module attributes {stable_mosaic.version = 11 : i64} {
  func.func @_actor_fused_kernel(%arg0: memref<48x324xf32, #tpu.memory_space<vmem>>, %arg1: memref<488x128xf32, #tpu.memory_space<vmem>>, %arg2: memref<2x16xf32, #tpu.memory_space<vmem>>) attributes {dimension_semantics = [], scalar_prefetch = 0 : i64, scratch_operands = 0 : i64, tpu.core_type = #tpu.core_type<tc>} {
    %c0 = arith.constant 0 : index
    %c0_0 = arith.constant 0 : index
    %0 = vector.load %arg0[%c0, %c0_0] : memref<48x324xf32, #tpu.memory_space<vmem>>, vector<18x324xf32>
    %c24 = arith.constant 24 : index
    %c0_1 = arith.constant 0 : index
    %1 = vector.load %arg0[%c24, %c0_1] : memref<48x324xf32, #tpu.memory_space<vmem>>, vector<2x6xf32>
    %c32 = arith.constant 32 : index
    %c0_2 = arith.constant 0 : index
    %2 = vector.load %arg0[%c32, %c0_2] : memref<48x324xf32, #tpu.memory_space<vmem>>, vector<2x4xf32>
    %c40 = arith.constant 40 : index
    %c0_3 = arith.constant 0 : index
    %3 = vector.load %arg0[%c40, %c0_3] : memref<48x324xf32, #tpu.memory_space<vmem>>, vector<6x18xf32>
    %c0_4 = arith.constant 0 : index
    %c0_5 = arith.constant 0 : index
    %4 = vector.load %arg1[%c0_4, %c0_5] : memref<488x128xf32, #tpu.memory_space<vmem>>, vector<324x72xf32>
    %c328 = arith.constant 328 : index
    %c0_6 = arith.constant 0 : index
    %5 = vector.load %arg1[%c328, %c0_6] : memref<488x128xf32, #tpu.memory_space<vmem>>, vector<1x72xf32>
    %c336 = arith.constant 336 : index
    %c0_7 = arith.constant 0 : index
    %6 = vector.load %arg1[%c336, %c0_7] : memref<488x128xf32, #tpu.memory_space<vmem>>, vector<72x8xf32>
    %c408 = arith.constant 408 : index
    %c0_8 = arith.constant 0 : index
    %7 = vector.load %arg1[%c408, %c0_8] : memref<488x128xf32, #tpu.memory_space<vmem>>, vector<1x8xf32>
    %c416 = arith.constant 416 : index
    %c0_9 = arith.constant 0 : index
    %8 = vector.load %arg1[%c416, %c0_9] : memref<488x128xf32, #tpu.memory_space<vmem>>, vector<22x32xf32>
    %c440 = arith.constant 440 : index
    %c0_10 = arith.constant 0 : index
    %9 = vector.load %arg1[%c440, %c0_10] : memref<488x128xf32, #tpu.memory_space<vmem>>, vector<1x32xf32>
    %c448 = arith.constant 448 : index
    %c0_11 = arith.constant 0 : index
    %10 = vector.load %arg1[%c448, %c0_11] : memref<488x128xf32, #tpu.memory_space<vmem>>, vector<32x8xf32>
    %c480 = arith.constant 480 : index
    %c0_12 = arith.constant 0 : index
    %11 = vector.load %arg1[%c480, %c0_12] : memref<488x128xf32, #tpu.memory_space<vmem>>, vector<1x8xf32>
    %cst = arith.constant dense<0.000000e+00> : vector<18x72xf32>
    %12 = tpu.matmul %0, %4, %cst {dimension_numbers = #tpu.dot_dimension_numbers<[1], [0], [0], [1], [0, 0, 1, 1], [], []>} : vector<18x324xf32>, vector<324x72xf32>, vector<18x72xf32> -> vector<18x72xf32>
    %13 = vector.broadcast %5 : vector<1x72xf32> to vector<18x72xf32>
    %14 = arith.addf %12, %13 : vector<18x72xf32>
    %cst_13 = arith.constant 0.000000e+00 : f32
    %15 = vector.broadcast %cst_13 : f32 to vector<18x72xf32>
    %16 = arith.maximumf %14, %15 : vector<18x72xf32>
    %cst_14 = arith.constant dense<0.000000e+00> : vector<18x8xf32>
    %17 = tpu.matmul %16, %6, %cst_14 {dimension_numbers = #tpu.dot_dimension_numbers<[1], [0], [0], [1], [0, 0, 1, 1], [], []>} : vector<18x72xf32>, vector<72x8xf32>, vector<18x8xf32> -> vector<18x8xf32>
    %18 = vector.broadcast %7 : vector<1x8xf32> to vector<18x8xf32>
    %19 = arith.addf %17, %18 : vector<18x8xf32>
    %cst_15 = arith.constant dense<0xFF800000> : vector<8xf32>
    %20 = vector.multi_reduction <maximumf>, %19, %cst_15 [0] : vector<18x8xf32> to vector<8xf32>
    %21 = vector.shape_cast %20 : vector<8xf32> to vector<1x8xf32>
    %22 = vector.broadcast %21 : vector<1x8xf32> to vector<18x8xf32>
    %23 = arith.subf %19, %22 : vector<18x8xf32>
    %24 = math.exp %23 : vector<18x8xf32>
    %cst_16 = arith.constant dense<0.000000e+00> : vector<6x8xf32>
    %25 = tpu.matmul %3, %24, %cst_16 {dimension_numbers = #tpu.dot_dimension_numbers<[1], [0], [0], [1], [0, 0, 1, 1], [], []>} : vector<6x18xf32>, vector<18x8xf32>, vector<6x8xf32> -> vector<6x8xf32>
    %26 = vector.extract_strided_slice %25 {offsets = [0, 0], sizes = [2, 8], strides = [1, 1]} : vector<6x8xf32> to vector<2x8xf32>
    %cst_17 = arith.constant 1.000000e+00 : f32
    %27 = vector.broadcast %cst_17 : f32 to vector<2x8xf32>
    %28 = arith.divf %27, %26 : vector<2x8xf32>
    %29 = vector.extract_strided_slice %25 {offsets = [2, 0], sizes = [2, 8], strides = [1, 1]} : vector<6x8xf32> to vector<2x8xf32>
    %30 = arith.mulf %29, %28 : vector<2x8xf32>
    %31 = vector.extract_strided_slice %25 {offsets = [4, 0], sizes = [2, 8], strides = [1, 1]} : vector<6x8xf32> to vector<2x8xf32>
    %32 = arith.mulf %31, %28 : vector<2x8xf32>
    %33 = vector.extract_strided_slice %8 {offsets = [0, 0], sizes = [8, 32], strides = [1, 1]} : vector<22x32xf32> to vector<8x32xf32>
    %cst_18 = arith.constant dense<0.000000e+00> : vector<2x32xf32>
    %34 = tpu.matmul %30, %33, %cst_18 {dimension_numbers = #tpu.dot_dimension_numbers<[1], [0], [0], [1], [0, 0, 1, 1], [], []>} : vector<2x8xf32>, vector<8x32xf32>, vector<2x32xf32> -> vector<2x32xf32>
    %35 = vector.extract_strided_slice %8 {offsets = [8, 0], sizes = [8, 32], strides = [1, 1]} : vector<22x32xf32> to vector<8x32xf32>
    %cst_19 = arith.constant dense<0.000000e+00> : vector<2x32xf32>
    %36 = tpu.matmul %32, %35, %cst_19 {dimension_numbers = #tpu.dot_dimension_numbers<[1], [0], [0], [1], [0, 0, 1, 1], [], []>} : vector<2x8xf32>, vector<8x32xf32>, vector<2x32xf32> -> vector<2x32xf32>
    %37 = arith.addf %34, %36 : vector<2x32xf32>
    %38 = vector.extract_strided_slice %8 {offsets = [16, 0], sizes = [6, 32], strides = [1, 1]} : vector<22x32xf32> to vector<6x32xf32>
    %cst_20 = arith.constant dense<0.000000e+00> : vector<2x32xf32>
    %39 = tpu.matmul %1, %38, %cst_20 {dimension_numbers = #tpu.dot_dimension_numbers<[1], [0], [0], [1], [0, 0, 1, 1], [], []>} : vector<2x6xf32>, vector<6x32xf32>, vector<2x32xf32> -> vector<2x32xf32>
    %40 = arith.addf %37, %39 : vector<2x32xf32>
    %41 = vector.broadcast %9 : vector<1x32xf32> to vector<2x32xf32>
    %42 = arith.addf %40, %41 : vector<2x32xf32>
    %cst_21 = arith.constant 0.000000e+00 : f32
    %43 = vector.broadcast %cst_21 : f32 to vector<2x32xf32>
    %44 = arith.maximumf %42, %43 : vector<2x32xf32>
    %cst_22 = arith.constant dense<0.000000e+00> : vector<2x8xf32>
    %45 = tpu.matmul %44, %10, %cst_22 {dimension_numbers = #tpu.dot_dimension_numbers<[1], [0], [0], [1], [0, 0, 1, 1], [], []>} : vector<2x32xf32>, vector<32x8xf32>, vector<2x8xf32> -> vector<2x8xf32>
    %46 = vector.broadcast %11 : vector<1x8xf32> to vector<2x8xf32>
    %47 = arith.addf %45, %46 : vector<2x8xf32>
    %48 = vector.extract_strided_slice %47 {offsets = [0, 0], sizes = [2, 4], strides = [1, 1]} : vector<2x8xf32> to vector<2x4xf32>
    %49 = vector.extract_strided_slice %47 {offsets = [0, 4], sizes = [2, 4], strides = [1, 1]} : vector<2x8xf32> to vector<2x4xf32>
    %50 = math.tanh %49 : vector<2x4xf32>
    %cst_23 = arith.constant 1.000000e+00 : f32
    %51 = vector.broadcast %cst_23 : f32 to vector<2x4xf32>
    %52 = arith.addf %50, %51 : vector<2x4xf32>
    %cst_24 = arith.constant 6.000000e+00 : f32
    %53 = vector.broadcast %cst_24 : f32 to vector<2x4xf32>
    %54 = arith.mulf %53, %52 : vector<2x4xf32>
    %cst_25 = arith.constant -1.000000e+01 : f32
    %55 = vector.broadcast %cst_25 : f32 to vector<2x4xf32>
    %56 = arith.addf %55, %54 : vector<2x4xf32>
    %57 = math.exp %56 : vector<2x4xf32>
    %58 = arith.mulf %2, %57 : vector<2x4xf32>
    %59 = arith.addf %48, %58 : vector<2x4xf32>
    %cst_26 = arith.constant -5.000000e-01 : f32
    %60 = vector.broadcast %cst_26 : f32 to vector<2x4xf32>
    %61 = arith.mulf %60, %2 : vector<2x4xf32>
    %62 = arith.mulf %61, %2 : vector<2x4xf32>
    %63 = arith.subf %62, %56 : vector<2x4xf32>
    %cst_27 = arith.constant dense<0.000000e+00> : vector<2xf32>
    %64 = vector.multi_reduction <add>, %63, %cst_27 [1] : vector<2x4xf32> to vector<2xf32>
    %65 = vector.shape_cast %64 : vector<2xf32> to vector<2x1xf32>
    %cst_28 = arith.constant 3.67575407 : f32
    %66 = vector.broadcast %cst_28 : f32 to vector<2x1xf32>
    %67 = arith.subf %65, %66 : vector<2x1xf32>
    %68 = math.tanh %48 : vector<2x4xf32>
    %69 = math.tanh %59 : vector<2x4xf32>
    %70 = arith.mulf %69, %69 : vector<2x4xf32>
    %cst_29 = arith.constant 1.000000e+00 : f32
    %71 = vector.broadcast %cst_29 : f32 to vector<2x4xf32>
    %72 = arith.subf %71, %70 : vector<2x4xf32>
    %cst_30 = arith.constant 0.000000e+00 : f32
    %73 = vector.broadcast %cst_30 : f32 to vector<2x4xf32>
    %74 = arith.maximumf %72, %73 : vector<2x4xf32>
    %cst_31 = arith.constant 9.99999997E-7 : f32
    %75 = vector.broadcast %cst_31 : f32 to vector<2x4xf32>
    %76 = arith.addf %74, %75 : vector<2x4xf32>
    %77 = math.log %76 : vector<2x4xf32>
    %cst_32 = arith.constant dense<0.000000e+00> : vector<2xf32>
    %78 = vector.multi_reduction <add>, %77, %cst_32 [1] : vector<2x4xf32> to vector<2xf32>
    %79 = vector.shape_cast %78 : vector<2xf32> to vector<2x1xf32>
    %80 = arith.subf %67, %79 : vector<2x1xf32>
    %c0_33 = arith.constant 0 : index
    %c0_34 = arith.constant 0 : index
    %81 = vector.load %arg2[%c0_33, %c0_34] : memref<2x16xf32, #tpu.memory_space<vmem>>, vector<2x4xf32>
    tpu.vector_store %arg2[%c0_33, %c0_34], %68 {strides = array<i32>} : memref<2x16xf32, #tpu.memory_space<vmem>>, vector<2x4xf32>,
    %c0_35 = arith.constant 0 : index
    %c4 = arith.constant 4 : index
    %82 = vector.load %arg2[%c0_35, %c4] : memref<2x16xf32, #tpu.memory_space<vmem>>, vector<2x4xf32>
    tpu.vector_store %arg2[%c0_35, %c4], %69 {strides = array<i32>} : memref<2x16xf32, #tpu.memory_space<vmem>>, vector<2x4xf32>,
    %c0_36 = arith.constant 0 : index
    %c8 = arith.constant 8 : index
    %83 = vector.load %arg2[%c0_36, %c8] : memref<2x16xf32, #tpu.memory_space<vmem>>, vector<2x4xf32>
    tpu.vector_store %arg2[%c0_36, %c8], %56 {strides = array<i32>} : memref<2x16xf32, #tpu.memory_space<vmem>>, vector<2x4xf32>,
    %84 = vector.shape_cast %80 : vector<2x1xf32> to vector<2x1xf32>
    %85 = vector.broadcast %84 : vector<2x1xf32> to vector<2x4xf32>
    %c0_37 = arith.constant 0 : index
    %c12 = arith.constant 12 : index
    %86 = vector.load %arg2[%c0_37, %c12] : memref<2x16xf32, #tpu.memory_space<vmem>>, vector<2x4xf32>
    tpu.vector_store %arg2[%c0_37, %c12], %85 {strides = array<i32>} : memref<2x16xf32, #tpu.memory_space<vmem>>, vector<2x4xf32>,
    return
  }
}

</mosaic_0001>

<bundles_post_ra>
// kernel: actor_forward.1
= control target key start
LH: loop header
LB: loop body
LE: loop exit
PB: predicated region body
PF: predicated region fallthrough
CT: control target
= control target key end

     0   :  { %v1106_v3 = vmov 0.0|0.0   ;;  %vm1107_vm0 = vmmov 0   ;;  %v1108_v4 = vmov 0.0   ;;  %vm98_vm1 = vcmask 1043456   ;;  %s1109_s15 = smov 124   ;;  %s1110_s17 = smov 4   ;;  %s1406_s1 = inlined_call_operand.vmem [shape: f32[488,128], index: 1, kind: input, shape index: {}]   ;;  %s1407_s0 = inlined_call_operand.vmem [shape: f32[48,324], index: 0, kind: input, shape index: {}]   ;;  %s1408_s2 = inlined_call_operand.vmem [shape: f32[2,16], index: 2, kind: output, shape index: {}]  }
   0x1   :  { %v39_v0 = vld [vmem:[%s1406_s1 + $0x80] sm:$0xff]  ;;  %v40_v1 = vld [vmem:[%s1406_s1 + $0x88] sm:$0xff]  ;;  %1052 = vmatprep.subr.bf16.mxu1 %v1106_v3  ;;  %949 = vmatprep.mubr.msk.f32.mxu1 %vm1107_vm0, %v1108_v4  ;;  %v41_v7 = vld [vmem:[%s1406_s1 + $0x90] sm:$0xff]  ;;  %vm88_vm2 = vcmask 556032   ;;  %vm269_vm3 = vcmask 588800   ;;  %vm359_vm4 = vcmask 64512  }
   0x2   :  { %v23_v2 = vld [vmem:[%s1406_s1] sm:$0xff]  ;;  %v1020_v5 = vpack.c.bf16 %v40_v1, %v39_v0  ;;  %v24_v6 = vld [vmem:[%s1406_s1 + $0x8] sm:$0xff]  ;;  %v42_v8 = vld [vmem:[%s1406_s1 + $0x98] sm:$0xff]  ;;  %vm362_vm5 = vcmask 58368   ;;  %vm385_vm6 = vcmask 1041408   ;;  %vm381_vm7 = vcmask 146432  }
   0x3   :  { %v1022_v9 = vpack.c.bf16 %v24_v6, %v23_v2  ;;  %v1024_v10 = vpack.c.bf16 %v42_v8, %v41_v7  ;;  %v25_v11 = vld [vmem:[%s1406_s1 + $0x10] sm:$0xff]  ;;  %v26_v12 = vld [vmem:[%s1406_s1 + $0x18] sm:$0xff]  ;;  %v43_v13 = vld [vmem:[%s1406_s1 + $0xa0] sm:$0xff]  ;;  %vm620_vm8 = vcmask 1045504   ;;  %vm616_vm9 = vcmask 48128  }
   0x4   :  { %1021 = vmatprep.subr.bf16.mxu0 %v1020_v5  ;;  %v44_v14 = vld [vmem:[%s1406_s1 + $0xa8] sm:$0xff]  ;;  %v1026_v15 = vpack.c.bf16 %v26_v12, %v25_v11  ;;  %v27_v17 = vld [vmem:[%s1406_s1 + $0x20] sm:$0xff]  ;;  %v45_v19 = vld [vmem:[%s1406_s1 + $0xb0] sm:$0xff]  ;;  %vm705_vm10 = vcmask 261120   ;;  %vm798_vm11 = vcmask 25600   ;;  %vm819_vm12 = vcmask 58400  }
   0x5   :  { %1023 = vmatpush3.bf16.msra.mxu0 %v1022_v9  ;;  %v1028_v16 = vpack.c.bf16 %v44_v14, %v43_v13  ;;  %v28_v18 = vld [vmem:[%s1406_s1 + $0x28] sm:$0xff]  ;;  %v46_v20 = vld [vmem:[%s1406_s1 + $0xb8] sm:$0xff]  ;;  %v55_v21 = vld [vmem:[%s1406_s1 + $0x100] sm:$0xff]  ;;  %vm824_vm13 = vcmask 91200   ;;  %vm826_vm14 = vcmask 124000  }
   0x6   :  { %1025 = vmatprep.subr.bf16.mxu0 %v1024_v10  ;;  %v56_v22 = vld [vmem:[%s1406_s1 + $0x108] sm:$0xff]  ;;  %v1030_v23 = vpack.c.bf16 %v28_v18, %v27_v17  ;;  %v57_v25 = vld [vmem:[%s1406_s1 + $0x110] sm:$0xff]  ;;  %v1032_v26 = vpack.c.bf16 %v46_v20, %v45_v19  ;;  %v30_v28 = vld [vmem:[%s1406_s1 + $0x38] sm:$0xff] }
   0x7   :  { %v1053_v24 = vpack.c.bf16 %v56_v22, %v55_v21  ;;  %v29_v27 = vld [vmem:[%s1406_s1 + $0x30] sm:$0xff]  ;;  %v58_v29 = vld [vmem:[%s1406_s1 + $0x118] sm:$0xff]  ;;  %v47_v30 = vld [vmem:[%s1406_s1 + $0xc0] sm:$0xff] }
   0x8   :  { %v48_v31 = vld [vmem:[%s1406_s1 + $0xc8] sm:$0xff]  ;;  %v1056_v32 = vpack.c.bf16 %v58_v29, %v57_v25  ;;  %v59_v33 = vld [vmem:[%s1406_s1 + $0x120] sm:$0xff]  ;;  %v1034_v35 = vpack.c.bf16 %v30_v28, %v29_v27  ;;  %v49_v40 = vld [vmem:[%s1406_s1 + $0xd0] sm:$0xff] }
   0x9   :  { %1027 = vmatpush3.bf16.msra.mxu0 %v1026_v15  ;;  %1054 = vmatpush3.bf16.msra.mxu1 %v1053_v24  ;;  %v60_v34 = vld [vmem:[%s1406_s1 + $0x128] sm:$0xff]  ;;  %v1036_v37 = vpack.c.bf16 %v48_v31, %v47_v30  ;;  %v31_v38 = vld [vmem:[%s1406_s1 + $0x40] sm:$0xff]  ;;  %v50_v41 = vld [vmem:[%s1406_s1 + $0xd8] sm:$0xff] }
   0xa   :  { %1029 = vmatprep.subr.bf16.mxu0 %v1028_v16  ;;  %1055 = vmatprep.subr.bf16.mxu1 %v1106_v3  ;;  %v12_v36 = vld [vmem:[%s1407_s0 + $0x8] sm:$0xff]  ;;  %v1059_v42 = vpack.c.bf16 %v60_v34, %v59_v33  ;;  %v61_v43 = vld [vmem:[%s1406_s1 + $0x130] sm:$0xff]  ;;  %v62_v44 = vld [vmem:[%s1406_s1 + $0x138] sm:$0xff]  ;;  %v1040_v46 = vpack.c.bf16 %v50_v41, %v49_v40 }
   0xb   :  { %v32_v39 = vld [vmem:[%s1406_s1 + $0x48] sm:$0xff]  ;;  %166 = vmatprep.mubr.f32.mxu0 %v12_v36  ;;  %v33_v47 = vld [vmem:[%s1406_s1 + $0x50] sm:$0xff]  ;;  %v34_v48 = vld [vmem:[%s1406_s1 + $0x58] sm:$0xff]  ;;  %v1062_v51 = vpack.c.bf16 %v62_v44, %v61_v43 }
   0xc   :  { %v1038_v45 = vpack.c.bf16 %v32_v39, %v31_v38  ;;  %v51_v49 = vld [vmem:[%s1406_s1 + $0xe0] sm:$0xff]  ;;  %v52_v50 = vld [vmem:[%s1406_s1 + $0xe8] sm:$0xff]  ;;  %v1042_v52 = vpack.c.bf16 %v34_v48, %v33_v47  ;;  %v53_v56 = vld [vmem:[%s1406_s1 + $0xf0] sm:$0xff] }
   0xd   :  { %1031 = vmatpush3.bf16.msra.mxu0 %v1030_v23  ;;  %1057 = vmatpush3.bf16.msra.mxu1 %v1056_v32  ;;  %v1044_v53 = vpack.c.bf16 %v52_v50, %v51_v49  ;;  %v35_v54 = vld [vmem:[%s1406_s1 + $0x60] sm:$0xff]  ;;  %v36_v55 = vld [vmem:[%s1406_s1 + $0x68] sm:$0xff]  ;;  %v54_v57 = vld [vmem:[%s1406_s1 + $0xf8] sm:$0xff] }
   0xe   :  { %1033 = vmatprep.subr.bf16.mxu0 %v1032_v26  ;;  %1058 = vmatprep.subr.bf16.mxu1 %v1106_v3  ;;  %v65_v58 = vld [vmem:[%s1406_s1 + $0x150] sm:$0xff]  ;;  %v66_v59 = vld [vmem:[%s1406_s1 + $0x158] sm:$0xff]  ;;  %v63_v60 = vld [vmem:[%s1406_s1 + $0x140] sm:$0xf]  ;;  %v1046_v61 = vpack.c.bf16 %v36_v55, %v35_v54  ;;  %v1048_v63 = vpack.c.bf16 %v54_v57, %v53_v56 }
   0xf   :  { %v13_v62 = vld [vmem:[%s1407_s0 + $0x10] sm:$0xff]  ;;  %v38_v1 = vld [vmem:[%s1406_s1 + $0x78] sm:$0xff]  ;;  %v1065_v2 = vpack.c.bf16 %v66_v59, %v65_v58  ;;  %v67_v5 = vld [vmem:[%s1406_s1 + $0x160] sm:$0xff] }
  0x10   :  { %v37_v0 = vld [vmem:[%s1406_s1 + $0x70] sm:$0xff]  ;;  %v68_v6 = vld [vmem:[%s1406_s1 + $0x168] sm:$0xff]  ;;  %v11_v10 = vld [vmem:[%s1407_s0] sm:$0xff] }
  0x11   :  { %1035 = vmatpush3.bf16.msra.mxu0 %v1034_v35  ;;  %1060 = vmatpush3.bf16.msra.mxu1 %v1059_v42  ;;  %v1050_v7 = vpack.c.bf16 %v38_v1, %v37_v0  ;;  %v16_v8 = vld [vmem:[%s1407_s0 + $0x28] sm:$0xff]  ;;  %v1068_v9 = vpack.c.bf16 %v68_v6, %v67_v5  ;;  %v19_v11 = vld [vmem:[%s1407_s0 + $0x40] sm:$0x3]  ;;  %v14_v13 = vld [vmem:[%s1407_s0 + $0x18] sm:$0xff] }
  0x12   :  { %1037 = vmatprep.subr.bf16.mxu0 %v1036_v37  ;;  %1061 = vmatprep.subr.bf16.mxu1 %v1106_v3  ;;  %v15_v12 = vld [vmem:[%s1407_s0 + $0x20] sm:$0xff]  ;;  %v18_v14 = vld [vmem:[%s1407_s0 + $0x38] sm:$0x3]  ;;  %v17_v15 = vld [vmem:[%s1407_s0 + $0x30] sm:$0x3] }
  0x13   :  { %v69_v16 = vld [vmem:[%s1406_s1 + $0x170] sm:$0xff]  ;;  %v70_v17 = vld [vmem:[%s1406_s1 + $0x178] sm:$0xff]  ;;  %v71_v19 = vld [vmem:[%s1406_s1 + $0x180] sm:$0xff] }
  0x14   :  { %v1071_v18 = vpack.c.bf16 %v70_v17, %v69_v16  ;;  %v72_v20 = vld [vmem:[%s1406_s1 + $0x188] sm:$0xff]  ;;  %v73_v22 = vld [vmem:[%s1406_s1 + $0x190] sm:$0xff]  ;;  %v837_v48 = vld [vmem:[%s1406_s1 + $0x198] ss:$0 sm:$0xff] }
  0x15   :  { %1039 = vmatpush3.bf16.msra.mxu0 %v1038_v45  ;;  %1063 = vmatpush3.bf16.msra.mxu1 %v1062_v51  ;;  %v1074_v21 = vpack.c.bf16 %v72_v20, %v71_v19  ;;  %v832_v30 = vld [vmem:[%s1406_s1 + $0x148] ss:$0 sm:$0xff]  ;;  %v22_v16 = vld [vmem:[%s1407_s0 + $0x78] sm:$0x3f] }
  0x16   :  { %1041 = vmatprep.subr.bf16.mxu0 %v1040_v46  ;;  %947 = vmatprep.subr.mxu1 %v1108_v4  ;;  %v76_v19 = vld [vmem:[%s1406_s1 + $0x1a8] sm:$0xff] }
  0x19   :  { %1043 = vmatpush3.bf16.msra.mxu0 %v1042_v52  ;;  %948 = vmatpush3.msk.msra.mxu1 %vm98_vm1, %v63_v60 }
  0x1a   :  { %1045 = vmatprep.subr.bf16.mxu0 %v1044_v53  ;;  %950 = vmatmul.mubr.msk.f32.vlgmr.msra.gmra.mrb[0].mxu1 %vm88_vm2, %v13_v62 }
  0x1b   :  { %1064 = vmatprep.subr.bf16.mxu1 %v1106_v3  ;;  %952 = vmatprep.mubr.msk.f32.mxu1 %vm1107_vm0, %v1108_v4 }
  0x1c   :  { %1066 = vmatpush3.bf16.msra.mxu1 %v1065_v2 }
  0x1d   :  { %1047 = vmatpush3.bf16.msra.mxu0 %v1046_v61  ;;  %1067 = vmatprep.subr.bf16.mxu1 %v1106_v3 }
  0x1e   :  { %1049 = vmatprep.subr.bf16.mxu0 %v1048_v63  ;;  %953 = vmatmul.mubr.msk.f32.gmra.mrb[2].mxu1 %vm88_vm2, %v16_v8 }
  0x1f   :  { %955 = vmatprep.mubr.msk.f32.mxu1 %vm1107_vm0, %v1108_v4 }
  0x20   :  { %1069 = vmatpush3.bf16.msra.mxu1 %v1068_v9 }
  0x21   :  { %1051 = vmatpush3.bf16.msra.mxu0 %v1050_v7  ;;  %1070 = vmatprep.subr.bf16.mxu1 %v1106_v3 }
  0x22   :  { %1076 = vmatprep.subr.bf16.mxu0 %v1106_v3  ;;  %956 = vmatmul.mubr.msk.f32.gmra.mrb[4].mxu1 %vm88_vm2, %v19_v11 }
  0x23   :  { %976 = vmatprep.mubr.msk.f32.mxu1 %vm1107_vm0, %v1108_v4 }
  0x24   :  { %167 = vmatmul.mubr.f32.vlgmr.msra.gmra.mrb[0].mxu0 %v11_v10  ;;  %1072 = vmatpush3.bf16.msra.mxu1 %v1071_v18  ;;  %v75_v18 = vld [vmem:[%s1406_s1 + $0x1a0] sm:$0xff] }
  0x25   :  { %171 = vmatprep.mubr.f32.mxu0 %v15_v12  ;;  %1073 = vmatprep.subr.bf16.mxu1 %v1106_v3 }
  0x28   :  { %172 = vmatmul.mubr.f32.gmra.mrb[2].mxu0 %v14_v13  ;;  %1075 = vmatpush3.bf16.msra.mxu1 %v1074_v21 }
  0x29   :  { %176 = vmatprep.mubr.f32.mxu0 %v18_v14  ;;  %974 = vmatprep.subr.mxu1 %v1108_v4 }
  0x2c   :  { %177 = vmatmul.mubr.f32.gmra.mrb[4].mxu0 %v17_v15  ;;  %975 = vmatpush3.msra.mxu1 %v73_v22 }
  0x2d   :  { %991 = vmatprep.mubr.msk.f32.mxu0 %vm1107_vm0, %v1108_v4  ;;  %999 = vmatprep.subr.mxu1 %v1108_v4 }
  0xed   :  { %v248_v23 = vpop.f32.mrb[0].mxu1 }
  0xee   :  { %v951_v24 = vpop.f32.mrb[1].mxu1 }
  0xf1   :  { %v253_v25 = vpop.f32.mrb[2].mxu1 }
  0xf2   :  { %v954_v26 = vpop.f32.mrb[3].mxu1 }
  0xf5   :  { %v258_v28 = vpop.f32.mrb[4].mxu1 }
  0xf6   :  { %v957_v31 = vpop.f32.mrb[5].mxu1 }
  0xf7   :  { %v883_v27 = vpop.f32.mrb[0].mxu0  ;;  %v79_v31 = vld [vmem:[%s1406_s1 + $0x1c0] sm:$0xff] }
  0xf8   :  { %v884_v29 = vpop.f32.mrb[1].mxu0 }
  0xf9   :  { %v885_v32 = vadd.f32 %v884_v29, %v883_v27  ;;  %v77_v29 = vld [vmem:[%s1406_s1 + $0x1b0] sm:$0x3f] }
  0xfb   :  { %v886_v33 = vpop.f32.mrb[2].mxu0  ;;  %v169_v34 = vadd.f32 %v885_v32, %v832_v30  ;;  %v80_v32 = vld [vmem:[%s1406_s1 + $0x1c8] sm:$0xff] }
  0xfc   :  { %v887_v35 = vpop.f32.mrb[3].mxu0 }
  0xfd   :  { %v249_v36 = vadd.f32 %v248_v23, %v169_v34  ;;  %v888_v37 = vadd.f32 %v887_v35, %v886_v33  ;;  %v1080_v33 = vpack.c.bf16 %v80_v32, %v79_v31  ;;  %v81_v34 = vld [vmem:[%s1406_s1 + $0x1d0] sm:$0xff] }
  0xff   :  { %v262_v38 = vmax.f32 %v249_v36, 0.0  ;;  %v889_v39 = vpop.f32.mrb[4].mxu0  ;;  %v174_v40 = vadd.f32 %v888_v37, %v832_v30 }
 0x100   :  { %v890_v41 = vpop.f32.mrb[5].mxu0 }
 0x101   :  { %v254_v42 = vadd.f32 %v253_v25, %v174_v40  ;;  %v891_v43 = vadd.f32 %v890_v41, %v889_v39  ;;  %977 = vmatmul.mubr.msk.f32.vlgmr.msra.gmra.mrb[6].mxu1 %vm269_vm3, %v262_v38  ;;  %v847_v41 = vld [vmem:[%s1406_s1 + $0x1b8] ss:$0 sm:$0xff] }
 0x102   :  { %979 = vmatprep.mubr.msk.f32.mxu1 %vm1107_vm0, %v1108_v4  ;;  %1000 = vmatpush3.msra.mxu1 %v75_v18 }
 0x103   :  { %v263_v44 = vmax.f32 %v254_v42, 0.0  ;;  %v179_v45 = vadd.f32 %v891_v43, %v832_v30  ;;  %1079 = vmatprep.subr.bf16.mxu1 %v1106_v3  ;;  %v20_v30 = vld [vmem:[%s1407_s0 + $0x48] sm:$0x3] }
 0x105   :  { %v259_v46 = vadd.f32 %v258_v28, %v179_v45  ;;  %980 = vmatmul.mubr.msk.f32.gmra.mrb[8].mxu1 %vm269_vm3, %v263_v44 }
 0x106   :  { %982 = vmatprep.mubr.msk.f32.mxu1 %vm1107_vm0, %v1108_v4 }
 0x107   :  { %v264_v47 = vmax.f32 %v259_v46, 0.0  ;;  %v848_v46 = vld [vmem:[%s1406_s1 + $0x1e0] ss:$0 sm:$0xff] }
 0x109   :  { %983 = vmatmul.mubr.msk.f32.gmra.mrb[10].mxu1 %vm269_vm3, %v264_v47 }
 0x10a   :  { %1001 = vmatprep.mubr.msk.f32.mxu1 %vm1107_vm0, %v1108_v4 }
 0x1d4   :  { %v345_v49 = vpop.f32.mrb[6].mxu1 }
 0x1d5   :  { %v978_v50 = vpop.f32.mrb[7].mxu1  ;;  %v346_v51 = vadd.f32 %v837_v48, %v345_v49 }
 0x1d7   :  { %v360_v55 = vsel %vm359_vm4, %v346_v51, -inf }
 0x1d8   :  { %v350_v52 = vpop.f32.mrb[8].mxu1 }
 0x1d9   :  { %v351_v53 = vadd.f32 %v837_v48, %v350_v52  ;;  %v981_v54 = vpop.f32.mrb[9].mxu1 }
 0x1db   :  { %v361_v56 = vsel %vm359_vm4, %v351_v53, -inf }
 0x1dc   :  { %v364_v57 = vmax.f32 %v360_v55, %v361_v56  ;;  %v355_v58 = vpop.f32.mrb[10].mxu1  ;;  %v21_v56 = vld [vmem:[%s1407_s0 + $0x60] sm:$0x3] }
 0x1dd   :  { %v356_v59 = vadd.f32 %v837_v48, %v355_v58  ;;  %v984_v60 = vpop.f32.mrb[11].mxu1 }
 0x1df   :  { %v363_v61 = vsel %vm362_vm5, %v356_v59, -inf }
 0x1e0   :  { %v365_v62 = vmax.f32 %v364_v57, %v363_v61  ;;  %v791_v57 = vmul.f32 -0.5, %v21_v56 }
 0x1e2   :  { %v366_v63 = vrot.slane %v365_v62, 4  ;;  %v792_v60 = vmul.f32 %v791_v57, %v21_v56 }
 0x1e4   :  { %v367_v0 = vmax.f32 %v365_v62, %v366_v63 }
 0x1e6   :  { %v368_v1 = vrot.slane %v367_v0, 2 }
 0x1e8   :  { %v369_v2 = vmax.f32 %v367_v0, %v368_v1 }
 0x1ea   :  { %v370_v5 = vrot.slane %v369_v2, 1 }
 0x1ec   :  { %v371_v6 = vmax.f32 %v369_v2, %v370_v5 }
 0x1ee   :  { %v372_v7 = vsub.f32 %v346_v51, %v371_v6  ;;  %v373_v8 = vsub.f32 %v351_v53, %v371_v6  ;;  %v374_v9 = vsub.f32 %v356_v59, %v371_v6 }
 0x1f0   :  { %v375_v10 = vmul.f32 1.442695, %v372_v7  ;;  %v377_v11 = vmul.f32 1.442695, %v373_v8  ;;  %v379_v12 = vmul.f32 1.442695, %v374_v9 }
 0x1f2   :  { %1090 = vpow2.f32 %v375_v10 }
 0x1f3   :  { %1092 = vpow2.f32 %v377_v11 }
 0x1f4   :  { %1094 = vpow2.f32 %v379_v12 }
 0x1fc   :  { %v1091_v13 = vpop.eup %1090 }
 0x1fd   :  { %v1093_v14 = vpop.eup %1092 }
 0x1fe   :  { %v1077_v15 = vpack.c.bf16 %v1093_v14, %v1091_v13  ;;  %v1095_v17 = vpop.eup %1094 }
 0x200   :  { %1078 = vmatpush3.bf16.msra.mxu0 %v1077_v15 }
 0x201   :  { %989 = vmatprep.subr.mxu0 %v1108_v4 }
 0x204   :  { %990 = vmatpush3.msk.msra.mxu0 %vm385_vm6, %v1095_v17 }
 0x205   :  { %992 = vmatmul.mubr.msk.f32.vlgmr.msra.gmra.mrb[6].mxu0 %vm381_vm7, %v22_v16  ;;  %994 = vmatprep.subr.mxu0 %v1108_v4 }
 0x206   :  { %996 = vmatprep.mubr.msk.f32.mxu0 %vm1107_vm0, %v1108_v4  ;;  %995 = vmatpush3.msra.mxu0 %v76_v19 }
 0x207   :  { %1004 = vmatprep.subr.mxu0 %v1108_v4 }
 0x2d8   :  { %v455_v20 = vpop.f32.mrb[6].mxu0 }
 0x2d9   :  { %1096 = vrcp.f32 %v455_v20  ;;  %v993_v21 = vpop.f32.mrb[7].mxu0 }
 0x2e3   :  { %v1097_v22 = vpop.eup %1096 }
 0x2e4   :  { %v462_v23 = vrot.slane %v1097_v22, 6  ;;  %v465_v24 = vrot.slane %v1097_v22, 4 }
 0x2e6   :  { %v464_v25 = vmul.f32 %v462_v23, %v455_v20  ;;  %v467_v26 = vmul.f32 %v465_v24, %v455_v20 }
 0x2e8   :  { %v469_v27 = vrot.slane %v467_v26, 4  ;;  %v543_v28 = vrot.slane %v464_v25, 2 }
 0x2ea   :  { %997 = vmatmul.mubr.msk.f32.vlgmr.msra.gmra.mrb[8].mxu0 %vm359_vm4, %v469_v27  ;;  %1002 = vmatmul.mubr.msk.f32.vlgmr.msra.gmra.mrb[12].mxu1 %vm359_vm4, %v543_v28 }
 0x2eb   :  { %1005 = vmatpush3.msk.msra.mxu0 %vm620_vm8, %v77_v29  ;;  %1006 = vmatprep.mubr.msk.f32.mxu0 %vm1107_vm0, %v1108_v4 }
 0x2ec   :  { %1017 = vmatprep.mubr.msk.f32.mxu1 %vm1107_vm0, %v1108_v4  ;;  %1081 = vmatpush3.bf16.msra.mxu1 %v1080_v33  ;;  %v82_v4 = vld [vmem:[%s1406_s1 + $0x1d8] sm:$0xff] }
 0x2ed   :  { %1082 = vmatprep.subr.bf16.mxu1 %v1106_v3  ;;  %v1083_v35 = vpack.c.bf16 %v82_v4, %v81_v34 }
 0x2ee   :  { %1007 = vmatmul.mubr.msk.f32.vlgmr.msra.gmra.mrb[10].mxu0 %vm616_vm9, %v20_v30 }
 0x2f0   :  { %1084 = vmatpush3.bf16.msra.mxu1 %v1083_v35 }
 0x3bd   :  { %v538_v36 = vpop.f32.mrb[8].mxu0  ;;  %v612_v37 = vpop.f32.mrb[12].mxu1 }
 0x3be   :  { %v613_v38 = vadd.f32 %v612_v37, %v538_v36  ;;  %v998_v39 = vpop.f32.mrb[9].mxu0  ;;  %v1003_v40 = vpop.f32.mrb[13].mxu1 }
 0x3c1   :  { %v690_v3 = vpop.f32.mrb[10].mxu0 }
 0x3c2   :  { %v694_v42 = vadd.f32 %v690_v3, %v613_v38  ;;  %v1008_v43 = vpop.f32.mrb[11].mxu0 }
 0x3c4   :  { %v699_v44 = vadd.f32 %v847_v41, %v694_v42 }
 0x3c6   :  { %v700_v45 = vmax.f32 %v699_v44, 0.0 }
 0x3c8   :  { %1018 = vmatmul.mubr.msk.f32.vlgmr.msra.gmra.mrb[14].mxu1 %vm705_vm10, %v700_v45 }
 0x49b   :  { %v775_v47 = vpop.f32.mrb[14].mxu1 }
 0x49c   :  { %v776_v48 = vadd.f32 %v848_v46, %v775_v47  ;;  %v1019_v49 = vpop.f32.mrb[15].mxu1 }
 0x49e   :  { %1098 = vtanh.f32 %v776_v48 }
 0x4a8   :  { %v1099_v50 = vpop.eup %1098 }
 0x4a9   :  { %v780_v51 = vadd.f32 1.0, %v1099_v50  ;;  %814 = vst.msk [vmem:[%s1408_s2] sm:$0x3] %vm798_vm11, %v1099_v50 }
 0x4ab   :  { %v781_v52 = vmul.f32 6.0, %v780_v51 }
 0x4ad   :  { %v782_v53 = vadd.f32 -10.0, %v781_v52 }
 0x4af   :  { %v783_v54 = vmul.f32 1.442695, %v782_v53 }
 0x4b1   :  { %1100 = vpow2.f32 %v783_v54 }
 0x4bb   :  { %v1101_v55 = vpop.eup %1100 }
 0x4bc   :  { %786 = vrot.lane.b32.xlu0 %v1101_v55, %s1109_s15 }
 0x4c0   :  { %794 = vrot.lane.b32.xlu0 %v782_v53, %s1109_s15 }
 0x52e   :  { %v787_v58 = vpop.permute.xlu0 %786 }
 0x52f   :  { %v789_v59 = vmul.f32 %v787_v58, %v21_v56 }
 0x531   :  { %v790_v61 = vadd.f32 %v789_v59, %v776_v48 }
 0x532   :  { %v795_v62 = vpop.permute.xlu0 %794 }
 0x533   :  { %1102 = vtanh.f32 %v790_v61  ;;  %v797_v63 = vsub.f32 %v792_v60, %v795_v62 }
 0x535   :  { %v799_v0 = vsel %vm798_vm11, %v797_v63, 0.0 }
 0x536   :  { %800 = vadd.xlane.f32.xlu1 %v799_v0 }
 0x53d   :  { %v1103_v1 = vpop.eup %1102 }
 0x53e   :  { %816 = vrot.lane.b32.xlu0 %v1103_v1, %s1110_s17  ;;  %v804_v2 = vmul.f32 %v1103_v1, %v1103_v1 }
 0x540   :  { %v805_v5 = vsub.f32 1.0, %v804_v2 }
 0x542   :  { %v806_v6 = vmax.f32 %v805_v5, 0.0 }
 0x544   :  { %v807_v7 = vadd.f32 1e-06, %v806_v6 }
 0x546   :  { %1104 = vlog2.f32 %v807_v7 }
 0x550   :  { %v1105_v8 = vpop.eup %1104 }
 0x551   :  { %v809_v9 = vmul.f32 0.6931472, %v1105_v8 }
 0x553   :  { %v810_v10 = vsel %vm798_vm11, %v809_v9, 0.0 }
 0x554   :  { %811 = vadd.xlane.f32.xlu1 %v810_v10 }
 0x565   :  { %821 = vrot.lane.b32.xlu1 %v782_v53, %s1110_s17 }
 0x5b0   :  { %v817_v11 = vpop.permute.xlu0 %816 }
 0x5b1   :  { %820 = vst.msk [vmem:[%s1408_s2] sm:$0x3] %vm819_vm12, %v817_v11 }
 0x5c3   :  { %v801_v12 = vpop.xlane.xlu1 %800 }
 0x5c4   :  { %v850_v14 = vadd.f32 -3.675754, %v801_v12 }
 0x5e1   :  { %v812_v13 = vpop.xlane.xlu1 %811 }
 0x5e2   :  { %v813_v15 = vsub.f32 %v850_v14, %v812_v13 }
 0x5e5   :  { %v822_v16 = vpop.permute.xlu1 %821 }
 0x5e6   :  { %825 = vst.msk [vmem:[%s1408_s2] sm:$0x3] %vm824_vm13, %v822_v16 }
 0x5e7   :  { %827 = vst.msk [vmem:[%s1408_s2] sm:$0x3] %vm826_vm14, %v813_v15 }

</bundles_post_ra>
